<compile_context>
chip_gen: v7x
topology: tpu7x:2x2x1
jax: 0.10.0
libtpu: 0.0.40
codegen_flags: <defaults>
</compile_context>

<pallas_src>
import functools

import jax
import jax.numpy as jnp
from jax.experimental import pallas as pl
from jax.experimental.pallas import tpu as pltpu


def _round_up(x, m):
    return ((x + m - 1) // m) * m


def _cde_kernel(z_ref, w1_ref, b1_ref, w2_ref, b2_ref, o_ref):
    # linear1 on the MXU (bf16 x bf16 -> f32 accumulate), bias + relu in f32.
    h = jnp.dot(z_ref[...], w1_ref[...], preferred_element_type=jnp.float32)
    h = jnp.maximum(h + b1_ref[...], 0.0)
    # linear2 on the MXU: feed bf16 (matches w2 dtype), accumulate in f32.
    h = h.astype(w2_ref.dtype)
    out = jnp.dot(h, w2_ref[...], preferred_element_type=jnp.float32)
    out = jnp.tanh(out + b2_ref[...])
    o_ref[...] = out.astype(o_ref.dtype)


def _fit_block_b(block_b, H, W, block_out, mm_bytes, budget_bytes):
    """Shrink the batch tile until the (double-buffered) tiles fit the budget."""
    while block_b > 8:
        z_bytes = block_b * H * mm_bytes * 2            # z tile, 2 buffers
        o_bytes = block_b * block_out * 4 * 2           # f32 out tile, 2 buffers
        w_bytes = (H * W * mm_bytes + W * 4) * 2        # w1 + b1 (grid-invariant)
        w_bytes += (W * block_out * mm_bytes + block_out * 4) * 2  # w2 + b2
        scratch = block_b * W * 4 + block_b * block_out * 4        # h + pre-store
        if z_bytes + o_bytes + w_bytes + scratch <= budget_bytes:
            return block_b
        block_b //= 2
    return block_b


def cde_func_forward(t, z, params, *, input_channels, hidden_channels,
                     hidden_width=128, block_b=512, block_out=2048,
                     use_bf16=True):
    """Pallas implementation of CDEFunc.forward.

    t is unused (as in the PyTorch module).
    z: (B, hidden_channels) float32
    returns: (B, hidden_channels, input_channels) float32
    """
    del t
    w1, b1, w2, b2 = params
    B, H = z.shape
    W = hidden_width
    OUT = input_channels * hidden_channels
    assert w1.shape == (H, W) and b1.shape == (1, W)
    assert w2.shape == (W, OUT) and b2.shape == (1, OUT)

    # --- Lane-dense output: pad OUT to a multiple of 128 (zero columns). ---
    OUT_pad = _round_up(OUT, 128)
    if OUT_pad != OUT:
        w2 = jnp.pad(w2, ((0, 0), (0, OUT_pad - OUT)))
        b2 = jnp.pad(b2, ((0, 0), (0, OUT_pad - OUT)))

    # --- bf16 MXU inputs, f32 accumulation / bias / tanh / output. ---
    mm_dtype = jnp.bfloat16 if use_bf16 else z.dtype
    mm_bytes = jnp.dtype(mm_dtype).itemsize
    z_mm = z.astype(mm_dtype)
    w1_mm = w1.astype(mm_dtype)
    w2_mm = w2.astype(mm_dtype)

    # --- Tile sizes. ---
    block_out = min(block_out, OUT_pad)          # multiple of 128 by construction
    if B >= 8:
        block_b = min(block_b, (B // 8) * 8)     # multiple of 8; trailing partial
    else:                                        # block is masked by Pallas.
        block_b = B                              # full dim (< 8) is allowed.
    # Keep well under v7x's 64 MiB physical VMEM (weights/bias + double-buffered
    # z/out tiles + in-kernel temporaries).
    vmem_budget = 40 * 1024 * 1024
    block_b = _fit_block_b(block_b, H, W, block_out, mm_bytes, vmem_budget)

    grid = (pl.cdiv(B, block_b), pl.cdiv(OUT_pad, block_out))

    # NOTE: w1/b1 are grid-invariant (index_map -> (0, 0)) and z is invariant
    # along the inner OUT axis, so Pallas skips re-DMA when the block index
    # does not change between consecutive grid steps.
    out_flat = pl.pallas_call(
        _cde_kernel,
        out_shape=jax.ShapeDtypeStruct((B, OUT_pad), z.dtype),
        grid_spec=pltpu.PrefetchScalarGridSpec(
            num_scalar_prefetch=0,
            grid=grid,
            in_specs=[
                pl.BlockSpec((block_b, H), lambda i, j: (i, 0)),       # z tile
                pl.BlockSpec((H, W), lambda i, j: (0, 0)),             # w1
                pl.BlockSpec((1, W), lambda i, j: (0, 0)),             # b1
                pl.BlockSpec((W, block_out), lambda i, j: (0, j)),     # w2 cols
                pl.BlockSpec((1, block_out), lambda i, j: (0, j)),     # b2 cols
            ],
            out_specs=pl.BlockSpec((block_b, block_out), lambda i, j: (i, j)),
        ),
        compiler_params=pltpu.CompilerParams(
            dimension_semantics=("parallel", "parallel"),
            vmem_limit_bytes=48 * 1024 * 1024),
    )(z_mm, w1_mm, b1, w2_mm, b2)

    if OUT_pad != OUT:
        out_flat = out_flat[:, :OUT]
    # Same as PyTorch: z.view(B, hidden_channels, input_channels)
    return out_flat.reshape(B, hidden_channels, input_channels)


def init_params(key, input_channels, hidden_channels, hidden_width=128):
    """Deterministic synthetic parameters (shapes match the torch module)."""
    k1, k2, k3, k4 = jax.random.split(key, 4)
    H, W, OUT = hidden_channels, hidden_width, input_channels * hidden_channels
    # stored as (in, out); equivalent to torch Linear weight.T
    w1 = jax.random.normal(k1, (H, W), jnp.float32) * (1.0 / jnp.sqrt(H))
    b1 = jax.random.normal(k2, (1, W), jnp.float32) * 0.01
    w2 = jax.random.normal(k3, (W, OUT), jnp.float32) * (1.0 / jnp.sqrt(W))
    b2 = jax.random.normal(k4, (1, OUT), jnp.float32) * 0.01
    return (w1, b1, w2, b2)


def cde_func_reference(t, z, params, *, input_channels, hidden_channels,
                       use_bf16=True):
    """Pure-JAX reference matching the kernel's precision choices."""
    del t
    w1, b1, w2, b2 = params
    B = z.shape[0]
    if use_bf16:
        z = z.astype(jnp.bfloat16)
        w1 = w1.astype(jnp.bfloat16)
        w2 = w2.astype(jnp.bfloat16)
    h = jnp.dot(z, w1, preferred_element_type=jnp.float32) + b1
    h = jnp.maximum(h, 0.0)
    if use_bf16:
        h = h.astype(jnp.bfloat16)
    out = jnp.tanh(jnp.dot(h, w2, preferred_element_type=jnp.float32) + b2)
    return out.reshape(B, hidden_channels, input_channels)


def _check(batch, input_channels, hidden_channels, hidden_width, seed):
    key = jax.random.PRNGKey(seed)
    kz, kp = jax.random.split(key)
    z = jax.random.normal(kz, (batch, hidden_channels), jnp.float32)
    t = jnp.float32(0.0)  # unused, mirrors the torch signature
    params = init_params(kp, input_channels, hidden_channels, hidden_width)

    fwd = functools.partial(cde_func_forward,
                            input_channels=input_channels,
                            hidden_channels=hidden_channels,
                            hidden_width=hidden_width)
    out = jax.block_until_ready(fwd(t, z, params))
    ref = cde_func_reference(t, z, params,
                             input_channels=input_channels,
                             hidden_channels=hidden_channels)
    assert out.shape == (batch, hidden_channels, input_channels), out.shape
    assert jnp.allclose(out, ref, atol=2e-3, rtol=2e-3), (
        float(jnp.max(jnp.abs(out - ref))))


if __name__ == "__main__":
    # Small config matching the module defaults (OUT = 4*32 = 128, lane-dense).
    _check(batch=16, input_channels=4, hidden_channels=32, hidden_width=128,
           seed=0)
    # Ragged config: OUT = 3*20 = 60 (padded to 128 inside the wrapper) and a
    # batch that is not a multiple of the tile (exercises partial blocks).
    _check(batch=50, input_channels=3, hidden_channels=20, hidden_width=128,
           seed=0)
    print("KERNEL_OK")
</pallas_src>

<mosaic_0001>
module attributes {stable_mosaic.version = 11 : i64} {
  func.func @_cde_kernel(%arg0: i32, %arg1: i32, %arg2: memref<16x32xbf16, #tpu.memory_space<vmem>>, %arg3: memref<32x128xbf16, #tpu.memory_space<vmem>>, %arg4: memref<1x128xf32, #tpu.memory_space<vmem>>, %arg5: memref<128x128xbf16, #tpu.memory_space<vmem>>, %arg6: memref<1x128xf32, #tpu.memory_space<vmem>>, %arg7: memref<16x128xf32, #tpu.memory_space<vmem>>) attributes {dimension_semantics = [#tpu.dimension_semantics<parallel>, #tpu.dimension_semantics<parallel>], iteration_bounds = array<i64: 1, 1>, scalar_prefetch = 0 : i64, scratch_operands = 0 : i64, tpu.core_type = #tpu.core_type<tc>, window_params = [{transform_indices = @transform_0, window_bounds = array<i64: 16, 32>}, {pipeline_mode = #tpu.pipeline_mode<synchronous>, transform_indices = @transform_1, window_bounds = array<i64: 32, 128>}, {pipeline_mode = #tpu.pipeline_mode<synchronous>, transform_indices = @transform_2, window_bounds = array<i64: 1, 128>}, {transform_indices = @transform_3, window_bounds = array<i64: 128, 128>}, {transform_indices = @transform_4, window_bounds = array<i64: 1, 128>}, {transform_indices = @transform_5, window_bounds = array<i64: 16, 128>}]} {
    %c0 = arith.constant 0 : index
    %c0_0 = arith.constant 0 : index
    %0 = vector.load %arg2[%c0, %c0_0] : memref<16x32xbf16, #tpu.memory_space<vmem>>, vector<16x32xbf16>
    %c0_1 = arith.constant 0 : index
    %c0_2 = arith.constant 0 : index
    %1 = vector.load %arg3[%c0_1, %c0_2] : memref<32x128xbf16, #tpu.memory_space<vmem>>, vector<32x128xbf16>
    %cst = arith.constant dense<0.000000e+00> : vector<16x128xf32>
    %2 = tpu.matmul %0, %1, %cst {dimension_numbers = #tpu.dot_dimension_numbers<[1], [0], [0], [1], [0, 0, 1, 1], [], []>} : vector<16x32xbf16>, vector<32x128xbf16>, vector<16x128xf32> -> vector<16x128xf32>
    %c0_3 = arith.constant 0 : index
    %c0_4 = arith.constant 0 : index
    %3 = vector.load %arg4[%c0_3, %c0_4] : memref<1x128xf32, #tpu.memory_space<vmem>>, vector<1x128xf32>
    %4 = vector.broadcast %3 : vector<1x128xf32> to vector<16x128xf32>
    %5 = arith.addf %2, %4 : vector<16x128xf32>
    %cst_5 = arith.constant 0.000000e+00 : f32
    %6 = vector.broadcast %cst_5 : f32 to vector<16x128xf32>
    %7 = arith.maximumf %5, %6 : vector<16x128xf32>
    %8 = arith.truncf %7 : vector<16x128xf32> to vector<16x128xbf16>
    %c0_6 = arith.constant 0 : index
    %c0_7 = arith.constant 0 : index
    %9 = vector.load %arg5[%c0_6, %c0_7] : memref<128x128xbf16, #tpu.memory_space<vmem>>, vector<128x128xbf16>
    %cst_8 = arith.constant dense<0.000000e+00> : vector<16x128xf32>
    %10 = tpu.matmul %8, %9, %cst_8 {dimension_numbers = #tpu.dot_dimension_numbers<[1], [0], [0], [1], [0, 0, 1, 1], [], []>} : vector<16x128xbf16>, vector<128x128xbf16>, vector<16x128xf32> -> vector<16x128xf32>
    %c0_9 = arith.constant 0 : index
    %c0_10 = arith.constant 0 : index
    %11 = vector.load %arg6[%c0_9, %c0_10] : memref<1x128xf32, #tpu.memory_space<vmem>>, vector<1x128xf32>
    %12 = vector.broadcast %11 : vector<1x128xf32> to vector<16x128xf32>
    %13 = arith.addf %10, %12 : vector<16x128xf32>
    %14 = math.tanh %13 : vector<16x128xf32>
    %c0_11 = arith.constant 0 : index
    %c0_12 = arith.constant 0 : index
    %15 = vector.load %arg7[%c0_11, %c0_12] : memref<16x128xf32, #tpu.memory_space<vmem>>, vector<16x128xf32>
    tpu.vector_store %arg7[%c0_11, %c0_12], %14 {strides = array<i32>} : memref<16x128xf32, #tpu.memory_space<vmem>>, vector<16x128xf32>,
    return
  }
  func.func @transform_0(%arg0: i32, %arg1: i32) -> (i32, i32) {
    %c0_i32 = arith.constant 0 : i32
    %c0_i32_0 = arith.constant 0 : i32
    return %arg0, %c0_i32 : i32, i32
  }
  func.func @transform_1(%arg0: i32, %arg1: i32) -> (i32, i32) {
    %c0_i32 = arith.constant 0 : i32
    %c0_i32_0 = arith.constant 0 : i32
    %c0_i32_1 = arith.constant 0 : i32
    return %c0_i32, %c0_i32_0 : i32, i32
  }
  func.func @transform_2(%arg0: i32, %arg1: i32) -> (i32, i32) {
    %c0_i32 = arith.constant 0 : i32
    %c0_i32_0 = arith.constant 0 : i32
    %c0_i32_1 = arith.constant 0 : i32
    return %c0_i32, %c0_i32_0 : i32, i32
  }
  func.func @transform_3(%arg0: i32, %arg1: i32) -> (i32, i32) {
    %c0_i32 = arith.constant 0 : i32
    %c0_i32_0 = arith.constant 0 : i32
    return %c0_i32, %arg1 : i32, i32
  }
  func.func @transform_4(%arg0: i32, %arg1: i32) -> (i32, i32) {
    %c0_i32 = arith.constant 0 : i32
    %c0_i32_0 = arith.constant 0 : i32
    return %c0_i32, %arg1 : i32, i32
  }
  func.func @transform_5(%arg0: i32, %arg1: i32) -> (i32, i32) {
    %c0_i32 = arith.constant 0 : i32
    return %arg0, %arg1 : i32, i32
  }
}

</mosaic_0001>

<bundles_post_ra>
// kernel: tpu_custom_call.1
= control target key start
LH: loop header
LB: loop body
LE: loop exit
PB: predicated region body
PF: predicated region fallthrough
CT: control target
= control target key end

     0   :  { %10 = vsyncpa [#allocation3], 0  ;;  %s558_s0 = inlined_call_operand.hbm [shape: bf16[16,32], index: 0, kind: input, shape index: {}]   ;;  %s559_s1 = inlined_call_operand.hbm [shape: bf16[32,128], index: 1, kind: input, shape index: {}]   ;;  %s560_s2 = inlined_call_operand.vmem [shape: f32[1,128], index: 2, kind: input, shape index: {}]   ;;  %s561_s3 = inlined_call_operand.hbm [shape: bf16[128,128], index: 3, kind: input, shape index: {}]   ;;  %s562_s4 = inlined_call_operand.vmem [shape: f32[1,128], index: 4, kind: input, shape index: {}]   ;;  %s563_s5 = inlined_call_operand.hbm [shape: f32[16,128], index: 5, kind: output, shape index: {}]  }
   0x1   :  { %11 = vsyncpa [#allocation6], 0 }
   0x2   :  { %12 = vsyncpa [#allocation4], 0  ;;  %s448_s18 = smov [#allocation5]   ;;  %s449_s20 = smov [#allocation2]  }
   0x3   :  { %s30_s19 = sshll.u32 %s448_s18, 4  ;;  %s18_s21 = sshll.u32 %s449_s20, 4  ;;  %s31_s19 = int_to_ptr.vmem [resolvable:$true] %s30_s19  ;;  %s488_s21 = int_to_ptr.vmem [resolvable:$true] %s18_s21 }
   0x4   :  { %s354_s24 = scalar_lea.hbm %s559_s1, 256 }
   0x5   :  { %p355_p0 = scmp.ne.s32.totalorder %s559_s1, %s354_s24  ;;  %p358_p1 = scmp.lt.u32.totalorder %s354_s24, %s559_s1 }
   0x7   :  { %p360_p2 = pnand %p358_p1, %p355_p0 }
   0x9   :  { %363 = shalt.err (!%p360_p2)
}
   0xa   :  { %s364_s29 = scalar_lea.vmem %s31_s19, 256  ;;  %p369_p4 = scmp.lt.s32.totalorder %s31_s19, %s31_s19 }
   0xb   :  { %p365_p3 = scmp.ne.s32.totalorder %s31_s19, %s364_s29  ;;  %p370_p5 = scmp.lt.s32.totalorder %s364_s29, %s364_s29 }
   0xd   :  { %p371_p6 = por %p370_p5, %p369_p4 }
   0xf   :  { %p372_p7 = pnand %p371_p6, %p365_p3 }
  0x11   :  { %375 = shalt.err (!%p372_p7)
}
  0x12   :  { %s450_s30 = smov 64   ;;  %s451_s6 = smov 4  }
  0x13   :  { %36 = dma.hbm_to_vmem [thread:$0]  %s559_s1, 256, %s31_s19, [#allocation6], %s450_s30, %s450_s30, %s451_s6  }
  0x14   :  { %s376_s11 = scalar_lea.hbm %s558_s0, 128 }
  0x15   :  { %p377_p8 = scmp.ne.s32.totalorder %s558_s0, %s376_s11  ;;  %p380_p9 = scmp.lt.u32.totalorder %s376_s11, %s558_s0 }
  0x17   :  { %p382_p10 = pnand %p380_p9, %p377_p8 }
  0x19   :  { %385 = shalt.err (!%p382_p10)
}
  0x1a   :  { %s386_s16 = scalar_lea.vmem %s488_s21, 128  ;;  %p391_p12 = scmp.lt.s32.totalorder %s488_s21, %s488_s21 }
  0x1b   :  { %p387_p11 = scmp.ne.s32.totalorder %s488_s21, %s386_s16  ;;  %p392_p13 = scmp.lt.s32.totalorder %s386_s16, %s386_s16 }
  0x1d   :  { %p393_p0 = por %p392_p13, %p391_p12 }
  0x1f   :  { %p394_p1 = pnand %p393_p0, %p387_p11 }
  0x21   :  { %397 = shalt.err (!%p394_p1)
}
  0x22   :  { %24 = dma.hbm_to_vmem [thread:$0]  %s558_s0, 128, %s488_s21, [#allocation3], %s450_s30, %s450_s30, %s451_s6  }
  0x23   :  { %s452_s18 = smov [#allocation7]   ;;  %s398_s23 = scalar_lea.hbm %s561_s3, 1024 }
  0x24   :  { %s44_s19 = sshll.u32 %s452_s18, 4  ;;  %p399_p2 = scmp.ne.s32.totalorder %s561_s3, %s398_s23  ;;  %s45_s19 = int_to_ptr.vmem [resolvable:$true] %s44_s19 }
  0x25   :  { %p402_p3 = scmp.lt.u32.totalorder %s398_s23, %s561_s3 }
  0x27   :  { %p404_p4 = pnand %p402_p3, %p399_p2 }
  0x29   :  { %407 = shalt.err (!%p404_p4)
}
  0x2a   :  { %s408_s28 = scalar_lea.vmem %s45_s19, 1024  ;;  %p413_p6 = scmp.lt.s32.totalorder %s45_s19, %s45_s19 }
  0x2b   :  { %p409_p5 = scmp.ne.s32.totalorder %s45_s19, %s408_s28  ;;  %p414_p7 = scmp.lt.s32.totalorder %s408_s28, %s408_s28 }
  0x2d   :  { %p415_p8 = por %p414_p7, %p413_p6 }
  0x2f   :  { %p416_p9 = pnand %p415_p8, %p409_p5 }
  0x31   :  { %419 = shalt.err (!%p416_p9)
}
  0x32   :  { %50 = dma.hbm_to_vmem [thread:$0]  %s561_s3, 1024, %s45_s19, [#allocation6], %s450_s30, %s450_s30, %s451_s6  }
  0x33   :  { %442 = dma.done.wait [#allocation3], 128  }
  0x34   :  { %443 = vsyncadd [#allocation3], 4294967168 }
  0x35   :  { %444 = dma.done.wait [#allocation6], 1280  }
  0x36   :  { %445 = vsyncadd [#allocation6], 4294966016  ;;  %v453_v0 = vmov 0.0   ;;  %vm454_vm0 = vmmov 0   ;;  %v339_v1 = vld [vmem:[#allocation5] sm:$0xff]   ;;  %v340_v2 = vld [vmem:[#allocation5 + $0x8] sm:$0xff]  }
  0x37   :  { %301 = vmatprep.subr.bf16.mxu0 %v453_v0  ;;  %305 = vmatprep.mubr.msk.bf16.mxu0 %vm454_vm0, %v453_v0  ;;  %v342_v3 = vld [vmem:[#allocation7] sm:$0xff]   ;;  %v341_v4 = vld [vmem:[#allocation2] sm:$0xff]   ;;  %vm93_vm1 = vcmask 261120   ;;  %v344_v6 = vld [vmem:[#allocation7 + $0x10] sm:$0xff]  }
  0x38   :  { %309 = vmatprep.subr.bf16.mxu1 %v453_v0  ;;  %325 = vmatprep.mubr.msk.bf16.mxu1 %vm454_vm0, %v453_v0  ;;  %v343_v5 = vld [vmem:[#allocation7 + $0x8] sm:$0xff]   ;;  %v345_v7 = vld [vmem:[#allocation7 + $0x18] sm:$0xff]   ;;  %v346_v8 = vld [vmem:[#allocation7 + $0x20] sm:$0xff]  }
  0x39   :  { %302 = vmatpush3.bf16.msra.mxu0 %v339_v1  ;;  %310 = vmatpush3.bf16.msra.mxu1 %v342_v3  ;;  %v347_v9 = vld [vmem:[#allocation7 + $0x28] sm:$0xff]   ;;  %v348_v10 = vld [vmem:[#allocation7 + $0x30] sm:$0xff]   ;;  %v349_v11 = vld [vmem:[#allocation7 + $0x38] sm:$0xff]  }
  0x3a   :  { %303 = vmatprep.subr.bf16.mxu0 %v453_v0  ;;  %311 = vmatprep.subr.bf16.mxu1 %v453_v0  ;;  %v275_v12 = vld [vmem:[%s560_s2] ss:$0 sm:$0xff]  ;;  %s455_s2 = smov [#allocation8]  }
  0x3b   :  { %v280_v22 = vld [vmem:[%s562_s4] ss:$0 sm:$0xff]  ;;  %s262_s7 = sshll.u32 %s455_s2, 4  ;;  %s263_s7 = int_to_ptr.vmem [resolvable:$true] %s262_s7 }
  0x3c   :  { %s420_s8 = scalar_lea.vmem %s263_s7, 256  ;;  %p425_p11 = scmp.lt.s32.totalorder %s263_s7, %s263_s7 }
  0x3d   :  { %304 = vmatpush3.bf16.msra.mxu0 %v340_v2  ;;  %312 = vmatpush3.bf16.msra.mxu1 %v343_v5  ;;  %p421_p10 = scmp.ne.s32.totalorder %s263_s7, %s420_s8  ;;  %p426_p12 = scmp.lt.s32.totalorder %s420_s8, %s420_s8 }
  0x3e   :  { %313 = vmatprep.subr.bf16.mxu1 %v453_v0 }
  0x3f   :  { %p427_p13 = por %p426_p12, %p425_p11 }
  0x40   :  { %306 = vmatmul.mubr.msk.bf16.vlgmr.msra.gmra.mrb[0].mxu0 %vm93_vm1, %v341_v4 }
  0x41   :  { %314 = vmatpush3.bf16.msra.mxu1 %v344_v6  ;;  %p428_p0 = pnand %p427_p13, %p421_p10 }
  0x42   :  { %315 = vmatprep.subr.bf16.mxu1 %v453_v0 }
  0x45   :  { %316 = vmatpush3.bf16.msra.mxu1 %v345_v7 }
  0x46   :  { %317 = vmatprep.subr.bf16.mxu1 %v453_v0 }
  0x49   :  { %318 = vmatpush3.bf16.msra.mxu1 %v346_v8 }
  0x4a   :  { %319 = vmatprep.subr.bf16.mxu1 %v453_v0 }
  0x4d   :  { %320 = vmatpush3.bf16.msra.mxu1 %v347_v9 }
  0x4e   :  { %321 = vmatprep.subr.bf16.mxu1 %v453_v0 }
  0x51   :  { %322 = vmatpush3.bf16.msra.mxu1 %v348_v10 }
  0x52   :  { %323 = vmatprep.subr.bf16.mxu1 %v453_v0 }
  0x55   :  { %324 = vmatpush3.bf16.msra.mxu1 %v349_v11 }
 0x113   :  { %v131_v13 = vpop.f32.mrb[0].mxu0 }
 0x114   :  { %v132_v14 = vadd.f32 %v275_v12, %v131_v13  ;;  %v307_v15 = vpop.f32.mrb[1].mxu0 }
 0x115   :  { %v134_v16 = vpop.f32.mrb[2].mxu0 }
 0x116   :  { %v135_v17 = vadd.f32 %v275_v12, %v134_v16  ;;  %v308_v18 = vpop.f32.mrb[3].mxu0  ;;  %v138_v19 = vmax.f32 %v132_v14, 0.0 }
 0x118   :  { %v139_v20 = vmax.f32 %v135_v17, 0.0 }
 0x11a   :  { %v140_v21 = vpack.c.bf16 %v139_v20, %v138_v19 }
 0x11c   :  { %326 = vmatmul.mubr.bf16.vlgmr.msra.gmra.mrb[0].mxu1 %v140_v21 }
 0x1ef   :  { %v246_v23 = vpop.f32.mrb[0].mxu1 }
 0x1f0   :  { %v247_v24 = vadd.f32 %v280_v22, %v246_v23  ;;  %v327_v25 = vpop.f32.mrb[1].mxu1 }
 0x1f1   :  { %v249_v26 = vpop.f32.mrb[2].mxu1 }
 0x1f2   :  { %350 = vtanh.f32 %v247_v24  ;;  %v250_v27 = vadd.f32 %v280_v22, %v249_v26  ;;  %v328_v28 = vpop.f32.mrb[3].mxu1 }
 0x1f4   :  { %352 = vtanh.f32 %v250_v27 }
 0x1fc   :  { %v351_v29 = vpop.eup %350 }
 0x1fd   :  { %255 = vst [vmem:[#allocation8] sm:$0xff] %v351_v29 }
 0x1fe   :  { %v353_v30 = vpop.eup %352 }
 0x1ff   :  { %256 = vst [vmem:[#allocation8 + $0x8] sm:$0xff] %v353_v30 }
 0x200   :  { %431 = shalt.err (!%p428_p0)
}
 0x201   :  { %s432_s10 = scalar_lea.hbm %s563_s5, 256 }
 0x202   :  { %p433_p1 = scmp.ne.s32.totalorder %s563_s5, %s432_s10  ;;  %p436_p2 = scmp.lt.u32.totalorder %s432_s10, %s563_s5 }
 0x204   :  { %p438_p3 = pnand %p436_p2, %p433_p1 }
 0x206   :  { %441 = shalt.err (!%p438_p3)
}
 0x207   :  { %s456_s15 = smov 128   ;;  %s457_s16 = smov 8  }
 0x208   :  { %268 = dma.vmem_to_hbm [thread:$0]  %s263_s7, 256, %s563_s5, [#allocation4], %s456_s15, %s456_s15, %s457_s16  }
 0x209   :  { %446 = dma.done.wait [#allocation4], 256  }
 0x20a   :  { %447 = vsyncadd [#allocation4], 4294967040 }
 0x20b   :  { %272 = vsyncpa [#allocation3], 1 }
 0x20c   :  { %273 = vsyncpa [#allocation6], 1 }
 0x20d   :  { %274 = vsyncpa [#allocation4], 1 }

</bundles_post_ra>
